<compile_context>
chip_gen: v5e
topology: v5e:2x2
jax: 0.10.0
libtpu: 0.0.40
codegen_flags: <defaults>
</compile_context>

<pallas_src>
from functools import partial

import jax
import jax.numpy as jnp
from jax.experimental import pallas as pl
from jax.experimental.pallas import tpu as pltpu

_LANE = 128      # vreg lane width
_SUBLANE = 8     # vreg sublane count (f32)


def _cdiv(a, b):
    return -(-a // b)


def _round_up(x, m):
    return _cdiv(x, m) * m


def _derive_batch_tiling(B, max_tile=512, min_parallel_batch=64):
    """Minimal-padding batch tiling; >=2 (even) grid steps for v7x megacore."""
    num_tiles = _cdiv(B, max_tile)
    if B >= min_parallel_batch:
        num_tiles = max(num_tiles, 2)
        num_tiles += num_tiles % 2          # even steps -> balanced 2-TC split
    batch_tile = _round_up(_cdiv(B, num_tiles), _SUBLANE)
    return num_tiles, batch_tile, num_tiles * batch_tile


def label_decoder_kernel(z_ref,
                         w1_ref, b1_ref,
                         w2_ref, b2_ref,
                         w3_ref, b3_ref,
                         w4_ref, b4_ref,
                         out_ref, *, approx_sigmoid):
    # MXU operand dtype comes from the (already cast) weights; accumulation,
    # bias add and all elementwise math stay f32.
    cdtype = w1_ref.dtype

    def sigmoid(x):
        if approx_sigmoid:
            # exp on EUP; approx reciprocal also stays on the EUP slot
            # (no VALU Newton-refinement chain).
            return pl.reciprocal(1.0 + jnp.exp(-x), approx=True)
        return jax.nn.sigmoid(x)

    def swish(x):
        return x * sigmoid(x)

    # Layer 1: Linear(z_dim -> Hp) + Swish
    h = jnp.dot(z_ref[...].astype(cdtype), w1_ref[...],
                preferred_element_type=jnp.float32) + b1_ref[...]
    h = swish(h)
    # Layer 2: Linear(Hp -> Hp) + Swish
    h = jnp.dot(h.astype(cdtype), w2_ref[...],
                preferred_element_type=jnp.float32) + b2_ref[...]
    h = swish(h)
    # Layer 3: Linear(Hp -> Hp) + Swish
    h = jnp.dot(h.astype(cdtype), w3_ref[...],
                preferred_element_type=jnp.float32) + b3_ref[...]
    h = swish(h)
    # Layer 4: Linear(Hp -> label_dim), final sigmoid (narrow, un-padded N)
    logits = jnp.dot(h.astype(cdtype), w4_ref[...],
                     preferred_element_type=jnp.float32) + b4_ref[...]
    out_ref[...] = sigmoid(logits).astype(out_ref.dtype)


def prepare_params(params, *, compute_dtype=jnp.bfloat16, lane_multiple=_LANE):
    """One-time weight prep: pad hidden dim to lane_multiple, cast weights.

    Zero padding is numerically inert: swish(0) = 0 feeds zero rows of the
    next padded weight; the label dim is NOT padded (narrow output).
    On v6e/v7x with hidden_dim >= 256 consider lane_multiple=256 (2x256 MXU);
    keep 128 on v5e.
    """
    z_dim, hidden = params["w1"].shape
    label = params["w4"].shape[1]
    Hp = _round_up(hidden, lane_multiple)
    hp = Hp - hidden

    def pad_w(w, row_pad, col_pad):
        return jnp.pad(w, ((0, row_pad), (0, col_pad))).astype(compute_dtype)

    def pad_b(b, col_pad):
        return jnp.pad(b.reshape(1, -1), ((0, 0), (0, col_pad))).astype(jnp.float32)

    return dict(
        w1=pad_w(params["w1"], 0, hp),  b1=pad_b(params["b1"], hp),
        w2=pad_w(params["w2"], hp, hp), b2=pad_b(params["b2"], hp),
        w3=pad_w(params["w3"], hp, hp), b3=pad_b(params["b3"], hp),
        w4=pad_w(params["w4"], hp, 0),  b4=pad_b(params["b4"], 0),
        z_dim=z_dim, hidden=hidden, label=label, Hp=Hp,
        compute_dtype=jnp.dtype(compute_dtype),
    )


def label_decoder_forward(z, prepped, *, max_batch_tile=512,
                          min_parallel_batch=64, approx_sigmoid=True,
                          single_buffer_weights=False):
    """z: [B, z_dim] float32; prepped: output of prepare_params()."""
    B, z_dim = z.shape
    assert z_dim == prepped["z_dim"]
    Hp, label = prepped["Hp"], prepped["label"]

    num_tiles, batch_tile, Bp = _derive_batch_tiling(
        B, max_batch_tile, min_parallel_batch)
    zp = z if Bp == B else jnp.pad(z, ((0, Bp - B), (0, 0)))

    const = lambda i: (0, 0)   # weights/biases: one block, VMEM-resident

    def wspec(shape):
        if single_buffer_weights:
            # Constant index map -> never re-fetched; single-buffer to halve
            # weight VMEM residency (useful on v7x's 64 MiB VMEM).
            return pl.BlockSpec(shape, const, pipeline_mode=pl.Buffered(1))
        return pl.BlockSpec(shape, const)

    in_specs = [
        pl.BlockSpec((batch_tile, z_dim), lambda i: (i, 0)),
        wspec((z_dim, Hp)), wspec((1, Hp)),
        wspec((Hp, Hp)),    wspec((1, Hp)),
        wspec((Hp, Hp)),    wspec((1, Hp)),
        wspec((Hp, label)), wspec((1, label)),
    ]
    out_spec = pl.BlockSpec((batch_tile, label), lambda i: (i, 0))

    # Explicit VMEM budget: weights (+biases) x buffering, double-buffered
    # z/out tiles, headroom for the [batch_tile, Hp] activations.
    w_itemsize = prepped["compute_dtype"].itemsize
    w_bytes = ((z_dim * Hp + 2 * Hp * Hp + Hp * label) * w_itemsize
               + (3 * Hp + label) * 4)
    w_bytes *= 1 if single_buffer_weights else 2
    io_bytes = 2 * batch_tile * (z_dim + label) * 4
    act_bytes = 4 * batch_tile * Hp * 4
    vmem_limit = min(120 * 1024 * 1024,
                     max(32 * 1024 * 1024,
                         int(1.5 * (w_bytes + io_bytes + act_bytes)) + (2 << 20)))

    out = pl.pallas_call(
        partial(label_decoder_kernel, approx_sigmoid=approx_sigmoid),
        out_shape=jax.ShapeDtypeStruct((Bp, label), jnp.float32),
        grid_spec=pltpu.PrefetchScalarGridSpec(
            num_scalar_prefetch=0,
            grid=(num_tiles,),
            in_specs=in_specs,
            out_specs=out_spec,
        ),
        compiler_params=pltpu.CompilerParams(
            dimension_semantics=("parallel",),
            vmem_limit_bytes=vmem_limit),
    )(zp, prepped["w1"], prepped["b1"], prepped["w2"], prepped["b2"],
      prepped["w3"], prepped["b3"], prepped["w4"], prepped["b4"])

    return out if Bp == B else out[:B]


def init_params(key, z_dim, label_dim, hidden_dim):
    """PyTorch-Linear-style init (uniform +/- 1/sqrt(fan_in)).

    Weights stored transposed: [in_features, out_features]; biases [out]."""
    def linear(k, fan_in, fan_out):
        kw, kb = jax.random.split(k)
        bound = 1.0 / jnp.sqrt(fan_in)
        w = jax.random.uniform(kw, (fan_in, fan_out), jnp.float32,
                               minval=-bound, maxval=bound)
        b = jax.random.uniform(kb, (fan_out,), jnp.float32,
                               minval=-bound, maxval=bound)
        return w, b

    k1, k2, k3, k4 = jax.random.split(key, 4)
    w1, b1 = linear(k1, z_dim, hidden_dim)
    w2, b2 = linear(k2, hidden_dim, hidden_dim)
    w3, b3 = linear(k3, hidden_dim, hidden_dim)
    w4, b4 = linear(k4, hidden_dim, label_dim)
    return dict(w1=w1, b1=b1, w2=w2, b2=b2, w3=w3, b3=b3, w4=w4, b4=b4)


def reference_forward(z, p):
    """Pure-JAX reference mirroring the PyTorch module."""
    swish = lambda x: x * jax.nn.sigmoid(x)
    h = swish(z @ p["w1"] + p["b1"])
    h = swish(h @ p["w2"] + p["b2"])
    h = swish(h @ p["w3"] + p["b3"])
    return jax.nn.sigmoid(h @ p["w4"] + p["b4"])


if __name__ == "__main__":
    z_dim, label_dim, hidden_dim = 16, 8, 32

    key = jax.random.PRNGKey(0)
    k_params, k_z1, k_z2 = jax.random.split(key, 3)
    params = init_params(k_params, z_dim, label_dim, hidden_dim)

    # One-time weight prep (padding + cast hoisted out of the forward pass).
    prepped_f32 = prepare_params(params, compute_dtype=jnp.float32)
    prepped_bf16 = prepare_params(params)              # bf16 MXU operands

    # 1) Small batch: single grid step, f32 + exact sigmoid -> tight tolerance.
    z_small = jax.random.normal(k_z1, (8, z_dim), dtype=jnp.float32)
    out = jax.block_until_ready(
        label_decoder_forward(z_small, prepped_f32, approx_sigmoid=False))
    ref = reference_forward(z_small, params)
    assert out.shape == (8, label_dim)
    assert jnp.allclose(out, ref, atol=1e-5, rtol=1e-5)

    # 2) Ragged batch (200 -> 2 tiles of 104, Bp=208): exercises minimal-pad
    #    tiling + forced >=2 "parallel" steps; f32 + approx-reciprocal sigmoid.
    z_big = jax.random.normal(k_z2, (200, z_dim), dtype=jnp.float32)
    ref_big = reference_forward(z_big, params)
    out_big = jax.block_until_ready(label_decoder_forward(z_big, prepped_f32))
    assert out_big.shape == (200, label_dim)
    assert jnp.allclose(out_big, ref_big, atol=1e-2)

    # 3) Default path: bf16 MXU operands (f32 accumulation) + approx sigmoid.
    out_bf16 = jax.block_until_ready(label_decoder_forward(z_big, prepped_bf16))
    assert out_bf16.shape == (200, label_dim)
    assert jnp.allclose(out_bf16, ref_big, atol=3e-2)

    print("KERNEL_OK")
</pallas_src>

<mosaic_0001>
module attributes {stable_mosaic.version = 11 : i64} {
  func.func @label_decoder_kernel(%arg0: i32, %arg1: memref<8x16xf32, #tpu.memory_space<vmem>>, %arg2: memref<16x128xf32, #tpu.memory_space<vmem>>, %arg3: memref<1x128xf32, #tpu.memory_space<vmem>>, %arg4: memref<128x128xf32, #tpu.memory_space<vmem>>, %arg5: memref<1x128xf32, #tpu.memory_space<vmem>>, %arg6: memref<128x128xf32, #tpu.memory_space<vmem>>, %arg7: memref<1x128xf32, #tpu.memory_space<vmem>>, %arg8: memref<128x8xf32, #tpu.memory_space<vmem>>, %arg9: memref<1x8xf32, #tpu.memory_space<vmem>>, %arg10: memref<8x8xf32, #tpu.memory_space<vmem>>) attributes {dimension_semantics = [#tpu.dimension_semantics<parallel>], iteration_bounds = array<i64: 1>, scalar_prefetch = 0 : i64, scratch_operands = 0 : i64, tpu.core_type = #tpu.core_type<tc>, window_params = [{transform_indices = @transform_0, window_bounds = array<i64: 8, 16>}, {pipeline_mode = #tpu.pipeline_mode<synchronous>, transform_indices = @transform_1, window_bounds = array<i64: 16, 128>}, {pipeline_mode = #tpu.pipeline_mode<synchronous>, transform_indices = @transform_2, window_bounds = array<i64: 1, 128>}, {pipeline_mode = #tpu.pipeline_mode<synchronous>, transform_indices = @transform_3, window_bounds = array<i64: 128, 128>}, {pipeline_mode = #tpu.pipeline_mode<synchronous>, transform_indices = @transform_4, window_bounds = array<i64: 1, 128>}, {pipeline_mode = #tpu.pipeline_mode<synchronous>, transform_indices = @transform_5, window_bounds = array<i64: 128, 128>}, {pipeline_mode = #tpu.pipeline_mode<synchronous>, transform_indices = @transform_6, window_bounds = array<i64: 1, 128>}, {pipeline_mode = #tpu.pipeline_mode<synchronous>, transform_indices = @transform_7, window_bounds = array<i64: 128, 8>}, {pipeline_mode = #tpu.pipeline_mode<synchronous>, transform_indices = @transform_8, window_bounds = array<i64: 1, 8>}, {transform_indices = @transform_9, window_bounds = array<i64: 8, 8>}]} {
    %c0 = arith.constant 0 : index
    %c0_0 = arith.constant 0 : index
    %0 = vector.load %arg1[%c0, %c0_0] : memref<8x16xf32, #tpu.memory_space<vmem>>, vector<8x16xf32>
    %c0_1 = arith.constant 0 : index
    %c0_2 = arith.constant 0 : index
    %1 = vector.load %arg2[%c0_1, %c0_2] : memref<16x128xf32, #tpu.memory_space<vmem>>, vector<16x128xf32>
    %cst = arith.constant dense<0.000000e+00> : vector<8x128xf32>
    %2 = tpu.matmul %0, %1, %cst {dimension_numbers = #tpu.dot_dimension_numbers<[1], [0], [0], [1], [0, 0, 1, 1], [], []>} : vector<8x16xf32>, vector<16x128xf32>, vector<8x128xf32> -> vector<8x128xf32>
    %c0_3 = arith.constant 0 : index
    %c0_4 = arith.constant 0 : index
    %3 = vector.load %arg3[%c0_3, %c0_4] : memref<1x128xf32, #tpu.memory_space<vmem>>, vector<1x128xf32>
    %4 = vector.broadcast %3 : vector<1x128xf32> to vector<8x128xf32>
    %5 = arith.addf %2, %4 : vector<8x128xf32>
    %6 = arith.negf %5 : vector<8x128xf32>
    %7 = math.exp %6 : vector<8x128xf32>
    %cst_5 = arith.constant 1.000000e+00 : f32
    %8 = vector.broadcast %cst_5 : f32 to vector<8x128xf32>
    %9 = arith.addf %8, %7 : vector<8x128xf32>
    %10 = arith.divf %8, %9 : vector<8x128xf32>
    %11 = arith.mulf %5, %10 : vector<8x128xf32>
    %c0_6 = arith.constant 0 : index
    %c0_7 = arith.constant 0 : index
    %12 = vector.load %arg4[%c0_6, %c0_7] : memref<128x128xf32, #tpu.memory_space<vmem>>, vector<128x128xf32>
    %cst_8 = arith.constant dense<0.000000e+00> : vector<8x128xf32>
    %13 = tpu.matmul %11, %12, %cst_8 {dimension_numbers = #tpu.dot_dimension_numbers<[1], [0], [0], [1], [0, 0, 1, 1], [], []>} : vector<8x128xf32>, vector<128x128xf32>, vector<8x128xf32> -> vector<8x128xf32>
    %c0_9 = arith.constant 0 : index
    %c0_10 = arith.constant 0 : index
    %14 = vector.load %arg5[%c0_9, %c0_10] : memref<1x128xf32, #tpu.memory_space<vmem>>, vector<1x128xf32>
    %15 = vector.broadcast %14 : vector<1x128xf32> to vector<8x128xf32>
    %16 = arith.addf %13, %15 : vector<8x128xf32>
    %17 = arith.negf %16 : vector<8x128xf32>
    %18 = math.exp %17 : vector<8x128xf32>
    %cst_11 = arith.constant 1.000000e+00 : f32
    %19 = vector.broadcast %cst_11 : f32 to vector<8x128xf32>
    %20 = arith.addf %19, %18 : vector<8x128xf32>
    %21 = arith.divf %19, %20 : vector<8x128xf32>
    %22 = arith.mulf %16, %21 : vector<8x128xf32>
    %c0_12 = arith.constant 0 : index
    %c0_13 = arith.constant 0 : index
    %23 = vector.load %arg6[%c0_12, %c0_13] : memref<128x128xf32, #tpu.memory_space<vmem>>, vector<128x128xf32>
    %cst_14 = arith.constant dense<0.000000e+00> : vector<8x128xf32>
    %24 = tpu.matmul %22, %23, %cst_14 {dimension_numbers = #tpu.dot_dimension_numbers<[1], [0], [0], [1], [0, 0, 1, 1], [], []>} : vector<8x128xf32>, vector<128x128xf32>, vector<8x128xf32> -> vector<8x128xf32>
    %c0_15 = arith.constant 0 : index
    %c0_16 = arith.constant 0 : index
    %25 = vector.load %arg7[%c0_15, %c0_16] : memref<1x128xf32, #tpu.memory_space<vmem>>, vector<1x128xf32>
    %26 = vector.broadcast %25 : vector<1x128xf32> to vector<8x128xf32>
    %27 = arith.addf %24, %26 : vector<8x128xf32>
    %28 = arith.negf %27 : vector<8x128xf32>
    %29 = math.exp %28 : vector<8x128xf32>
    %cst_17 = arith.constant 1.000000e+00 : f32
    %30 = vector.broadcast %cst_17 : f32 to vector<8x128xf32>
    %31 = arith.addf %30, %29 : vector<8x128xf32>
    %32 = arith.divf %30, %31 : vector<8x128xf32>
    %33 = arith.mulf %27, %32 : vector<8x128xf32>
    %c0_18 = arith.constant 0 : index
    %c0_19 = arith.constant 0 : index
    %34 = vector.load %arg8[%c0_18, %c0_19] : memref<128x8xf32, #tpu.memory_space<vmem>>, vector<128x8xf32>
    %cst_20 = arith.constant dense<0.000000e+00> : vector<8x8xf32>
    %35 = tpu.matmul %33, %34, %cst_20 {dimension_numbers = #tpu.dot_dimension_numbers<[1], [0], [0], [1], [0, 0, 1, 1], [], []>} : vector<8x128xf32>, vector<128x8xf32>, vector<8x8xf32> -> vector<8x8xf32>
    %c0_21 = arith.constant 0 : index
    %c0_22 = arith.constant 0 : index
    %36 = vector.load %arg9[%c0_21, %c0_22] : memref<1x8xf32, #tpu.memory_space<vmem>>, vector<1x8xf32>
    %37 = vector.broadcast %36 : vector<1x8xf32> to vector<8x8xf32>
    %38 = arith.addf %35, %37 : vector<8x8xf32>
    %39 = arith.negf %38 : vector<8x8xf32>
    %40 = math.exp %39 : vector<8x8xf32>
    %cst_23 = arith.constant 1.000000e+00 : f32
    %41 = vector.broadcast %cst_23 : f32 to vector<8x8xf32>
    %42 = arith.addf %41, %40 : vector<8x8xf32>
    %43 = arith.divf %41, %42 : vector<8x8xf32>
    %c0_24 = arith.constant 0 : index
    %c0_25 = arith.constant 0 : index
    %44 = vector.load %arg10[%c0_24, %c0_25] : memref<8x8xf32, #tpu.memory_space<vmem>>, vector<8x8xf32>
    tpu.vector_store %arg10[%c0_24, %c0_25], %43 {strides = array<i32>} : memref<8x8xf32, #tpu.memory_space<vmem>>, vector<8x8xf32>,
    return
  }
  func.func @transform_0(%arg0: i32) -> (i32, i32) {
    %c0_i32 = arith.constant 0 : i32
    %c0_i32_0 = arith.constant 0 : i32
    return %arg0, %c0_i32 : i32, i32
  }
  func.func @transform_1(%arg0: i32) -> (i32, i32) {
    %c0_i32 = arith.constant 0 : i32
    %c0_i32_0 = arith.constant 0 : i32
    %c0_i32_1 = arith.constant 0 : i32
    return %c0_i32, %c0_i32_0 : i32, i32
  }
  func.func @transform_2(%arg0: i32) -> (i32, i32) {
    %c0_i32 = arith.constant 0 : i32
    %c0_i32_0 = arith.constant 0 : i32
    %c0_i32_1 = arith.constant 0 : i32
    return %c0_i32, %c0_i32_0 : i32, i32
  }
  func.func @transform_3(%arg0: i32) -> (i32, i32) {
    %c0_i32 = arith.constant 0 : i32
    %c0_i32_0 = arith.constant 0 : i32
    %c0_i32_1 = arith.constant 0 : i32
    return %c0_i32, %c0_i32_0 : i32, i32
  }
  func.func @transform_4(%arg0: i32) -> (i32, i32) {
    %c0_i32 = arith.constant 0 : i32
    %c0_i32_0 = arith.constant 0 : i32
    %c0_i32_1 = arith.constant 0 : i32
    return %c0_i32, %c0_i32_0 : i32, i32
  }
  func.func @transform_5(%arg0: i32) -> (i32, i32) {
    %c0_i32 = arith.constant 0 : i32
    %c0_i32_0 = arith.constant 0 : i32
    %c0_i32_1 = arith.constant 0 : i32
    return %c0_i32, %c0_i32_0 : i32, i32
  }
  func.func @transform_6(%arg0: i32) -> (i32, i32) {
    %c0_i32 = arith.constant 0 : i32
    %c0_i32_0 = arith.constant 0 : i32
    %c0_i32_1 = arith.constant 0 : i32
    return %c0_i32, %c0_i32_0 : i32, i32
  }
  func.func @transform_7(%arg0: i32) -> (i32, i32) {
    %c0_i32 = arith.constant 0 : i32
    %c0_i32_0 = arith.constant 0 : i32
    %c0_i32_1 = arith.constant 0 : i32
    return %c0_i32, %c0_i32_0 : i32, i32
  }
  func.func @transform_8(%arg0: i32) -> (i32, i32) {
    %c0_i32 = arith.constant 0 : i32
    %c0_i32_0 = arith.constant 0 : i32
    %c0_i32_1 = arith.constant 0 : i32
    return %c0_i32, %c0_i32_0 : i32, i32
  }
  func.func @transform_9(%arg0: i32) -> (i32, i32) {
    %c0_i32 = arith.constant 0 : i32
    %c0_i32_0 = arith.constant 0 : i32
    return %arg0, %c0_i32 : i32, i32
  }
}

</mosaic_0001>

<bundles_post_ra>
// kernel: tpu_custom_call.1
= control target key start
LH: loop header
LB: loop body
LE: loop exit
PB: predicated region body
PF: predicated region fallthrough
CT: control target
= control target key end

     0   :  { %14 = vsyncpa [#allocation3], 0  ;;  %s598_s0 = inlined_call_operand.vmem [shape: f32[8,16], index: 0, kind: input, shape index: {}]   ;;  %s599_s1 = inlined_call_operand.hbm [shape: f32[16,128], index: 1, kind: input, shape index: {}]   ;;  %s600_s2 = inlined_call_operand.vmem [shape: f32[1,128], index: 2, kind: input, shape index: {}]   ;;  %s601_s3 = inlined_call_operand.vmem [shape: f32[128,128], index: 3, kind: input, shape index: {}]   ;;  %s602_s4 = inlined_call_operand.vmem [shape: f32[1,128], index: 4, kind: input, shape index: {}]   ;;  %s603_s5 = inlined_call_operand.hbm [shape: f32[128,128], index: 5, kind: input, shape index: {}]   ;;  %s604_s6 = inlined_call_operand.vmem [shape: f32[1,128], index: 6, kind: input, shape index: {}]   ;;  %s605_s7 = inlined_call_operand.vmem [shape: f32[128,8], index: 7, kind: input, shape index: {}]   ;;  %s606_s8 = inlined_call_operand.vmem [shape: f32[1,8], index: 8, kind: input, shape index: {}]   ;;  %s607_s9 = inlined_call_operand.hbm [shape: f32[8,8], index: 9, kind: output, shape index: {}]  }
   0x1   :  { %15 = vsyncpa [#allocation6], 0 }
   0x2   :  { %16 = vsyncpa [#allocation4], 0  ;;  %s23_s11 = sshll.u32 %s599_s1, 4  ;;  %s423_s12 = smov [#allocation2]   ;;  %s24_s11 = int_to_ptr.hbm [resolvable:$true] %s23_s11 }
   0x3   :  { %s25_s13 = sshll.u32 %s423_s12, 4  ;;  %s42_s16 = sshll.u32 %s603_s5, 4  ;;  %s26_s13 = int_to_ptr.vmem [resolvable:$true] %s25_s13  ;;  %s43_s16 = int_to_ptr.hbm [resolvable:$true] %s42_s16 }
   0x4   :  { %s424_s17 = smov 128   ;;  %s425_s18 = smov 8  }
   0x5   :  { %31 = dma.hbm_to_vmem [thread:$0]  %s24_s11, 256, %s26_s13, [#allocation3], %s424_s17, %s424_s17, %s425_s18  }
   0x6   :  { %s426_s19 = smov [#allocation5]  }
   0x7   :  { %s44_s20 = sshll.u32 %s426_s19, 4  ;;  %s45_s20 = int_to_ptr.vmem [resolvable:$true] %s44_s20 }
   0x8   :  { %50 = dma.hbm_to_vmem [thread:$0]  %s43_s16, 2048, %s45_s20, [#allocation6], %s424_s17, %s424_s17, %s425_s18  }
   0x9   :  { %417 = dma.done.wait [#allocation3], 256  }
   0xa   :  { %418 = vsyncadd [#allocation3], 4294967040 }
   0xb   :  { %419 = dma.done.wait [#allocation6], 2048  }
   0xc   :  { %420 = vsyncadd [#allocation6], 4294965248  ;;  %v67_v0 = vld [vmem:[#allocation2 + $0x8] sm:$0xff]  ;;  %v66_v1 = vld [vmem:[#allocation2] sm:$0xff]  ;;  %vm72_vm0 = vcmask 130048   ;;  %s427_s15 = smov [#allocation7]  }
   0xd   :  { %90 = vmatpush.msra.mxu0 %v67_v0  ;;  %v65_v2 = vld [vmem:[%s598_s0] sm:$0xff]  ;;  %v131_v3 = vld [vmem:[%s601_s3 + $0x78] sm:$0xff]  ;;  %v130_v4 = vld [vmem:[%s601_s3 + $0x70] sm:$0xff]  ;;  %s302_s16 = sshll.u32 %s427_s15, 4  ;;  %s303_s16 = int_to_ptr.vmem [resolvable:$true] %s302_s16 }
   0xe   :  { %136 = vmatpush.msra.mxu1 %v131_v3  ;;  %v129_v5 = vld [vmem:[%s601_s3 + $0x68] sm:$0xff]  ;;  %v128_v6 = vld [vmem:[%s601_s3 + $0x60] sm:$0xff]  ;;  %v127_v7 = vld [vmem:[%s601_s3 + $0x58] sm:$0xff] }
   0xf   :  { %91 = vmatpush.msra.mxu0 %v66_v1  ;;  %v126_v8 = vld [vmem:[%s601_s3 + $0x50] sm:$0xff]  ;;  %v125_v9 = vld [vmem:[%s601_s3 + $0x48] sm:$0xff]  ;;  %v124_v10 = vld [vmem:[%s601_s3 + $0x40] sm:$0xff] }
  0x10   :  { %315 = vmatmul.msk.f32.vlgmr.msra.gmra.mxu0 %vm72_vm0, %v65_v2  ;;  %137 = vmatpush.msra.mxu1 %v130_v4  ;;  %v123_v11 = vld [vmem:[%s601_s3 + $0x38] sm:$0xff]  ;;  %v122_v12 = vld [vmem:[%s601_s3 + $0x30] sm:$0xff]  ;;  %v121_v13 = vld [vmem:[%s601_s3 + $0x28] sm:$0xff]  ;;  %vm295_vm0 = vcmask 64512  }
  0x11   :  { %v120_v14 = vld [vmem:[%s601_s3 + $0x20] sm:$0xff]  ;;  %v119_v15 = vld [vmem:[%s601_s3 + $0x18] sm:$0xff]  ;;  %v118_v16 = vld [vmem:[%s601_s3 + $0x10] sm:$0xff] }
  0x12   :  { %138 = vmatpush.msra.mxu1 %v129_v5  ;;  %v117_v17 = vld [vmem:[%s601_s3 + $0x8] sm:$0xff]  ;;  %v325_v18 = vld [vmem:[%s600_s2] ss:$0 sm:$0xff]  ;;  %v189_v38 = vld [vmem:[#allocation5 + $0x68] sm:$0xff] }
  0x13   :  { %v116_v19 = vld [vmem:[%s601_s3] sm:$0xff]  ;;  %v191_v36 = vld [vmem:[#allocation5 + $0x78] sm:$0xff]  ;;  %v188_v39 = vld [vmem:[#allocation5 + $0x60] sm:$0xff] }
  0x14   :  { %139 = vmatpush.msra.mxu1 %v128_v6  ;;  %196 = vmatpush.msra.mxu2 %v191_v36  ;;  %v190_v37 = vld [vmem:[#allocation5 + $0x70] sm:$0xff]  ;;  %v187_v40 = vld [vmem:[#allocation5 + $0x58] sm:$0xff]  ;;  %v185_v42 = vld [vmem:[#allocation5 + $0x48] sm:$0xff] }
  0x15   :  { %v186_v41 = vld [vmem:[#allocation5 + $0x50] sm:$0xff]  ;;  %v184_v43 = vld [vmem:[#allocation5 + $0x40] sm:$0xff]  ;;  %v183_v44 = vld [vmem:[#allocation5 + $0x38] sm:$0xff] }
  0x16   :  { %140 = vmatpush.msra.mxu1 %v127_v7  ;;  %197 = vmatpush.msra.mxu2 %v190_v37  ;;  %v182_v45 = vld [vmem:[#allocation5 + $0x30] sm:$0xff]  ;;  %v181_v46 = vld [vmem:[#allocation5 + $0x28] sm:$0xff]  ;;  %v180_v47 = vld [vmem:[#allocation5 + $0x20] sm:$0xff] }
  0x17   :  { %v179_v48 = vld [vmem:[#allocation5 + $0x18] sm:$0xff]  ;;  %v178_v49 = vld [vmem:[#allocation5 + $0x10] sm:$0xff]  ;;  %v177_v50 = vld [vmem:[#allocation5 + $0x8] sm:$0xff] }
  0x18   :  { %141 = vmatpush.msra.mxu1 %v126_v8  ;;  %198 = vmatpush.msra.mxu2 %v189_v38  ;;  %v326_v51 = vld [vmem:[%s602_s4] ss:$0 sm:$0xff]  ;;  %v176_v52 = vld [vmem:[#allocation5] sm:$0xff]  ;;  %v251_v5 = vld [vmem:[%s605_s7 + $0x78] sm:$0xff] }
  0x19   :  { %256 = vmatpush.msra.mxu3 %v251_v5  ;;  %v250_v6 = vld [vmem:[%s605_s7 + $0x70] sm:$0xff]  ;;  %v249_v7 = vld [vmem:[%s605_s7 + $0x68] sm:$0xff]  ;;  %v248_v8 = vld [vmem:[%s605_s7 + $0x60] sm:$0xff] }
  0x1a   :  { %142 = vmatpush.msra.mxu1 %v125_v9  ;;  %199 = vmatpush.msra.mxu2 %v188_v39  ;;  %v247_v9 = vld [vmem:[%s605_s7 + $0x58] sm:$0xff]  ;;  %v328_v38 = vld [vmem:[%s606_s8] ss:$0 sm:$0xff]  ;;  %s304_s8 = sshll.u32 %s607_s9, 4  ;;  %s305_s8 = int_to_ptr.hbm [resolvable:$true] %s304_s8 }
  0x1b   :  { %257 = vmatpush.msra.mxu3 %v250_v6 }
  0x1c   :  { %143 = vmatpush.msra.mxu1 %v124_v10  ;;  %200 = vmatpush.msra.mxu2 %v187_v40  ;;  %v246_v10 = vld [vmem:[%s605_s7 + $0x50] sm:$0xff] }
  0x1d   :  { %258 = vmatpush.msra.mxu3 %v249_v7 }
  0x1e   :  { %144 = vmatpush.msra.mxu1 %v123_v11  ;;  %201 = vmatpush.msra.mxu2 %v186_v41  ;;  %v245_v11 = vld [vmem:[%s605_s7 + $0x48] sm:$0xff] }
  0x1f   :  { %259 = vmatpush.msra.mxu3 %v248_v8 }
  0x20   :  { %145 = vmatpush.msra.mxu1 %v122_v12  ;;  %202 = vmatpush.msra.mxu2 %v185_v42  ;;  %v244_v12 = vld [vmem:[%s605_s7 + $0x40] sm:$0xff] }
  0x21   :  { %260 = vmatpush.msra.mxu3 %v247_v9 }
  0x22   :  { %146 = vmatpush.msra.mxu1 %v121_v13  ;;  %203 = vmatpush.msra.mxu2 %v184_v43  ;;  %v243_v13 = vld [vmem:[%s605_s7 + $0x38] sm:$0xff] }
  0x23   :  { %261 = vmatpush.msra.mxu3 %v246_v10 }
  0x24   :  { %147 = vmatpush.msra.mxu1 %v120_v14  ;;  %204 = vmatpush.msra.mxu2 %v183_v44  ;;  %v242_v14 = vld [vmem:[%s605_s7 + $0x30] sm:$0xff] }
  0x25   :  { %262 = vmatpush.msra.mxu3 %v245_v11 }
  0x26   :  { %148 = vmatpush.msra.mxu1 %v119_v15  ;;  %205 = vmatpush.msra.mxu2 %v182_v45  ;;  %v241_v15 = vld [vmem:[%s605_s7 + $0x28] sm:$0xff] }
  0x27   :  { %263 = vmatpush.msra.mxu3 %v244_v12 }
  0x28   :  { %149 = vmatpush.msra.mxu1 %v118_v16  ;;  %206 = vmatpush.msra.mxu2 %v181_v46  ;;  %v240_v16 = vld [vmem:[%s605_s7 + $0x20] sm:$0xff] }
  0x29   :  { %264 = vmatpush.msra.mxu3 %v243_v13 }
  0x2a   :  { %150 = vmatpush.msra.mxu1 %v117_v17  ;;  %207 = vmatpush.msra.mxu2 %v180_v47  ;;  %v239_v17 = vld [vmem:[%s605_s7 + $0x18] sm:$0xff] }
  0x2b   :  { %265 = vmatpush.msra.mxu3 %v242_v14 }
  0x2c   :  { %151 = vmatpush.msra.mxu1 %v116_v19  ;;  %208 = vmatpush.msra.mxu2 %v179_v48  ;;  %v237_v19 = vld [vmem:[%s605_s7 + $0x8] sm:$0xff] }
  0x2d   :  { %266 = vmatpush.msra.mxu3 %v241_v15 }
  0x2e   :  { %209 = vmatpush.msra.mxu2 %v178_v49 }
  0x2f   :  { %267 = vmatpush.msra.mxu3 %v240_v16 }
  0x30   :  { %210 = vmatpush.msra.mxu2 %v177_v50 }
  0x31   :  { %268 = vmatpush.msra.mxu3 %v239_v17 }
  0x32   :  { %211 = vmatpush.msra.mxu2 %v176_v52 }
  0x8d   :  { %v93_v20 = vpop.f32.mrf.mxu0 }
  0x8e   :  { %v94_v21 = vadd.f32 %v325_v18, %v93_v20  ;;  %v238_v18 = vld [vmem:[%s605_s7 + $0x10] sm:$0xff]  ;;  %v327_v20 = vld [vmem:[%s604_s6] ss:$0 sm:$0xff] }
  0x8f   :  { %269 = vmatpush.msra.mxu3 %v238_v18 }
  0x90   :  { %v316_v22 = vmul.f32 -1.442695, %v94_v21 }
  0x91   :  { %270 = vmatpush.msra.mxu3 %v237_v19 }
  0x92   :  { %329 = vpow2.f32 %v316_v22 }
  0x98   :  { %v330_v23 = vpop.eup %329 }
  0x99   :  { %v99_v24 = vadd.f32 1.0, %v330_v23 }
  0x9b   :  { %331 = vrcp.f32 %v99_v24  ;;  %v111_v28 = vand.u32 2147483648, %v99_v24  ;;  %v109_v30 = vand.u32 2147483647, %v99_v24  ;;  %vm105_vm2 = vweird.f32 %v99_v24 }
  0x9d   :  { %v112_v32 = vor.u32 1.1754944e-38, %v111_v28  ;;  %vm110_vm4 = vcmp.eq.f32.partialorder %v109_v30, 8.507059e+37 }
  0xa1   :  { %v332_v25 = vpop.eup %331 }
  0xa2   :  { %v101_v26 = vmul.f32 %v332_v25, %v99_v24  ;;  %vm106_vm1 = vweird.f32 %v332_v25 }
  0xa3   :  { %vm107_vm3 = vmor %vm105_vm2, %vm106_vm1 }
  0xa4   :  { %v102_v27 = vsub.f32 1.0, %v101_v26 }
  0xa6   :  { %v103_v29 = vmul.f32 %v332_v25, %v102_v27 }
  0xa8   :  { %v104_v31 = vadd.f32 %v332_v25, %v103_v29 }
  0xaa   :  { %v108_v33 = vsel %vm107_vm3, %v332_v25, %v104_v31 }
  0xab   :  { %v113_v34 = vsel %vm110_vm4, %v112_v32, %v108_v33 }
  0xac   :  { %v115_v35 = vmul.f32 %v113_v34, %v94_v21  ;;  %v236_v21 = vld [vmem:[%s605_s7] sm:$0xff] }
  0xad   :  { %271 = vmatpush.msra.mxu3 %v236_v21 }
  0xae   :  { %152 = vmatmul.f32.vlgmr.msra.gmra.mxu1 %v115_v35 }
 0x12b   :  { %v153_v53 = vpop.f32.mrf.mxu1 }
 0x12c   :  { %v154_v54 = vadd.f32 %v326_v51, %v153_v53 }
 0x12e   :  { %v317_v55 = vmul.f32 -1.442695, %v154_v54 }
 0x130   :  { %333 = vpow2.f32 %v317_v55 }
 0x136   :  { %v334_v56 = vpop.eup %333 }
 0x137   :  { %v159_v57 = vadd.f32 1.0, %v334_v56 }
 0x139   :  { %335 = vrcp.f32 %v159_v57  ;;  %v171_v61 = vand.u32 2147483648, %v159_v57  ;;  %v169_v63 = vand.u32 2147483647, %v159_v57  ;;  %vm165_vm6 = vweird.f32 %v159_v57 }
 0x13b   :  { %v172_v1 = vor.u32 1.1754944e-38, %v171_v61  ;;  %vm170_vm8 = vcmp.eq.f32.partialorder %v169_v63, 8.507059e+37 }
 0x13f   :  { %v336_v58 = vpop.eup %335 }
 0x140   :  { %v161_v59 = vmul.f32 %v336_v58, %v159_v57  ;;  %vm166_vm5 = vweird.f32 %v336_v58 }
 0x141   :  { %vm167_vm7 = vmor %vm165_vm6, %vm166_vm5 }
 0x142   :  { %v162_v60 = vsub.f32 1.0, %v161_v59 }
 0x144   :  { %v163_v62 = vmul.f32 %v336_v58, %v162_v60 }
 0x146   :  { %v164_v0 = vadd.f32 %v336_v58, %v163_v62 }
 0x148   :  { %v168_v2 = vsel %vm167_vm7, %v336_v58, %v164_v0 }
 0x149   :  { %v173_v3 = vsel %vm170_vm8, %v172_v1, %v168_v2 }
 0x14a   :  { %v175_v4 = vmul.f32 %v173_v3, %v154_v54 }
 0x14c   :  { %212 = vmatmul.f32.vlgmr.msra.gmra.mxu2 %v175_v4 }
 0x1cf   :  { %v213_v22 = vpop.f32.mrf.mxu2 }
 0x1d0   :  { %v214_v23 = vadd.f32 %v327_v20, %v213_v22 }
 0x1d2   :  { %v318_v24 = vmul.f32 -1.442695, %v214_v23 }
 0x1d4   :  { %337 = vpow2.f32 %v318_v24 }
 0x1da   :  { %v338_v25 = vpop.eup %337 }
 0x1db   :  { %v219_v26 = vadd.f32 1.0, %v338_v25 }
 0x1dd   :  { %339 = vrcp.f32 %v219_v26  ;;  %v231_v30 = vand.u32 2147483648, %v219_v26  ;;  %v229_v32 = vand.u32 2147483647, %v219_v26  ;;  %vm225_vm10 = vweird.f32 %v219_v26 }
 0x1df   :  { %v232_v34 = vor.u32 1.1754944e-38, %v231_v30  ;;  %vm230_vm12 = vcmp.eq.f32.partialorder %v229_v32, 8.507059e+37 }
 0x1e3   :  { %v340_v27 = vpop.eup %339 }
 0x1e4   :  { %v221_v28 = vmul.f32 %v340_v27, %v219_v26  ;;  %vm226_vm9 = vweird.f32 %v340_v27 }
 0x1e5   :  { %vm227_vm11 = vmor %vm225_vm10, %vm226_vm9 }
 0x1e6   :  { %v222_v29 = vsub.f32 1.0, %v221_v28 }
 0x1e8   :  { %v223_v31 = vmul.f32 %v340_v27, %v222_v29 }
 0x1ea   :  { %v224_v33 = vadd.f32 %v340_v27, %v223_v31 }
 0x1ec   :  { %v228_v35 = vsel %vm227_vm11, %v340_v27, %v224_v33 }
 0x1ed   :  { %v233_v36 = vsel %vm230_vm12, %v232_v34, %v228_v35 }
 0x1ee   :  { %v235_v37 = vmul.f32 %v233_v36, %v214_v23 }
 0x1f0   :  { %272 = vmatmul.f32.vlgmr.msra.gmra.mxu3 %v235_v37 }
 0x273   :  { %v273_v39 = vpop.f32.mrf.mxu3 }
 0x274   :  { %v274_v40 = vadd.f32 %v328_v38, %v273_v39 }
 0x276   :  { %v319_v41 = vmul.f32 -1.442695, %v274_v40 }
 0x278   :  { %341 = vpow2.f32 %v319_v41 }
 0x27e   :  { %v342_v42 = vpop.eup %341 }
 0x27f   :  { %v279_v43 = vadd.f32 1.0, %v342_v42 }
 0x281   :  { %343 = vrcp.f32 %v279_v43  ;;  %v291_v47 = vand.u32 2147483648, %v279_v43  ;;  %v289_v49 = vand.u32 2147483647, %v279_v43  ;;  %vm285_vm14 = vweird.f32 %v279_v43 }
 0x283   :  { %v292_v51 = vor.u32 1.1754944e-38, %v291_v47  ;;  %vm290_vm1 = vcmp.eq.f32.partialorder %v289_v49, 8.507059e+37 }
 0x287   :  { %v344_v44 = vpop.eup %343 }
 0x288   :  { %v281_v45 = vmul.f32 %v344_v44, %v279_v43  ;;  %vm286_vm13 = vweird.f32 %v344_v44 }
 0x289   :  { %vm287_vm15 = vmor %vm285_vm14, %vm286_vm13 }
 0x28a   :  { %v282_v46 = vsub.f32 1.0, %v281_v45 }
 0x28c   :  { %v283_v48 = vmul.f32 %v344_v44, %v282_v46 }
 0x28e   :  { %v284_v50 = vadd.f32 %v344_v44, %v283_v48 }
 0x290   :  { %v288_v52 = vsel %vm287_vm15, %v344_v44, %v284_v50 }
 0x291   :  { %v293_v53 = vsel %vm290_vm1, %v292_v51, %v288_v52 }
 0x292   :  { %296 = vst.msk [vmem:[#allocation7] sm:$0xff] %vm295_vm0, %v293_v53 }
 0x293   :  { %307 = dma.vmem_to_hbm [thread:$0]  %s303_s16, 128, %s305_s8, [#allocation4]  }
 0x294   :  { %421 = dma.done.wait [#allocation4], 128  }
 0x295   :  { %422 = vsyncadd [#allocation4], 4294967168 }
 0x296   :  { %312 = vsyncpa [#allocation3], 1 }
 0x297   :  { %313 = vsyncpa [#allocation6], 1 }
 0x298   :  { %314 = vsyncpa [#allocation4], 1 }

</bundles_post_ra>
